<compile_context>
chip_gen: v7x
topology: tpu7x:2x2x1
jax: 0.10.0
libtpu: 0.0.40
codegen_flags: <defaults>
</compile_context>

<pallas_src>
import functools

import jax
import jax.numpy as jnp
from jax import lax
from jax.experimental import pallas as pl
from jax.experimental.pallas import tpu as pltpu

NUM_OPS = 5  # ['none', 'skip_connect', 'avg_pool_3x3', 'max_pool_3x3', 'sep_conv_3x3_lite']
_BN_EPS = 1e-5


def _mixed_op_kernel(w_ref, x_ref, row_ref, col_ref, icnt_ref, dw_ref, pw_ref,
                     o_ref, *, H, W):
    """One grid step = one image, channel-major lane-dense (C, H*W) layout.

    w_ref    : (5,)        SMEM  mixture weights (w[0]='none' unused; w[2],w[4] folded)
    x_ref    : (1, C, HW)  VMEM  image: channels on sublanes, flat spatial on lanes
    row_ref  : (1, HW)     VMEM  row index  h = l // W  (float32)
    col_ref  : (1, HW)     VMEM  col index  w = l %  W  (float32)
    icnt_ref : (1, HW)     VMEM  weights[2] / (# valid 3x3 taps)  (avg-pool, folded)
    dw_ref   : (9*C, 1)    VMEM  depthwise 3x3 weights, tap-major column blocks
    pw_ref   : (C, C)      VMEM  bf16 1x1 weights (Cout, Cin); BN & weights[4] folded
    o_ref    : (1, C, HW)  VMEM  output block
    """
    HW = H * W
    C = x_ref.shape[1]
    neg = jnp.finfo(jnp.float32).min

    x = x_ref[0]                                      # (C, HW), stays vreg-resident
    row = row_ref[...]                                # (1, HW)
    col = col_ref[...]                                # (1, HW)

    # dy-/dx-validity masks (3 each), reused across the 9 taps.
    rv = [(row >= float(-dy)) & (row <= float(H - 1 - dy)) for dy in (-1, 0, 1)]
    cv = [(col >= float(-dx)) & (col <= float(W - 1 - dx)) for dx in (-1, 0, 1)]

    sum9 = jnp.zeros((C, HW), jnp.float32)            # avg-pool numerator
    mx = jnp.full((C, HW), neg, jnp.float32)          # max-pool accumulator
    dwa = jnp.zeros((C, HW), jnp.float32)             # depthwise-conv accumulator

    k = 0
    for iy, dy in enumerate((-1, 0, 1)):
        for ix, dx in enumerate((-1, 0, 1)):
            s = dy * W + dx                           # flat spatial shift of this tap
            # Spatial shift == lane roll (XLU slot, overlaps VPU work).
            tap = x if s == 0 else pltpu.roll(x, shift=(-s) % HW, axis=1)
            valid = rv[iy] & cv[ix]                   # (1, HW); kills wrapped lanes
            vf = valid.astype(jnp.float32)
            tz = tap * vf                             # zero outside the image
            sum9 = sum9 + tz
            mx = jnp.maximum(mx, jnp.where(valid, tap, neg))   # pad acts as -inf
            dwa = dwa + jnp.maximum(tz, 0.0) * dw_ref[k * C:(k + 1) * C, :]
            k += 1

    # 1x1 conv on the MXU: (Cout, Cin) @ (Cin, HW), bf16 operands, f32 accumulate.
    conv = jnp.dot(pw_ref[...], dwa.astype(jnp.bfloat16),
                   preferred_element_type=jnp.float32)          # (C, HW)

    # weights[0] -> 'none' (zero op); weights[2], weights[4] already folded.
    o_ref[0] = w_ref[1] * x + sum9 * icnt_ref[...] + w_ref[3] * mx + conv


@jax.jit
def compressed_mixed_op(x_nchw, weights, dw_w, pw_w):
    """x_nchw: (N, C, H, W); weights: (NUM_OPS,); dw_w: (C,1,3,3); pw_w: (C,C,1,1)."""
    N, C, H, W = x_nchw.shape
    HW = H * W
    weights = weights.astype(jnp.float32)

    # Channel-major, spatially flattened layout: NCHW -> (N, C, H*W) is a *free*
    # reshape (no transpose, no padded copy, no extra wrapper HBM passes).
    x = x_nchw.reshape(N, C, HW).astype(jnp.float32)

    # Tiny per-position index vectors (mask wrapped roll lanes in-kernel).
    row_idx = jnp.repeat(jnp.arange(H, dtype=jnp.float32), W).reshape(1, HW)
    col_idx = jnp.tile(jnp.arange(W, dtype=jnp.float32), H).reshape(1, HW)

    # Avg-pool valid-tap reciprocal (count_include_pad=False), weights[2] folded in.
    rcnt = jnp.minimum(jnp.arange(H) + 1, H - 1) - jnp.maximum(jnp.arange(H) - 1, 0) + 1
    ccnt = jnp.minimum(jnp.arange(W) + 1, W - 1) - jnp.maximum(jnp.arange(W) - 1, 0) + 1
    cnt = jnp.outer(rcnt, ccnt).astype(jnp.float32).reshape(1, HW)
    icnt_w2 = weights[2] / cnt                                        # (1, HW)

    # Depthwise 3x3 weights, tap-major (9*C, 1) column blocks.
    dw_col = dw_w.reshape(C, 9).T.reshape(9 * C, 1).astype(jnp.float32)

    # 1x1 conv weights (Cout, Cin) with BN scale and weights[4] folded, bf16 for MXU.
    bn_scale = (1.0 + _BN_EPS) ** -0.5
    pw_k = (pw_w.reshape(C, C) * (bn_scale * weights[4])).astype(jnp.bfloat16)

    kernel = functools.partial(_mixed_op_kernel, H=H, W=W)
    out = pl.pallas_call(
        kernel,
        out_shape=jax.ShapeDtypeStruct((N, C, HW), jnp.float32),
        grid=(N,),
        in_specs=[
            pl.BlockSpec((NUM_OPS,), lambda n: (0,),
                         memory_space=pltpu.MemorySpace.SMEM),        # mixture weights
            pl.BlockSpec((1, C, HW), lambda n: (n, 0, 0)),            # image (C, HW)
            pl.BlockSpec((1, HW), lambda n: (0, 0)),                  # row index
            pl.BlockSpec((1, HW), lambda n: (0, 0)),                  # col index
            pl.BlockSpec((1, HW), lambda n: (0, 0)),                  # w2 / tap count
            pl.BlockSpec((9 * C, 1), lambda n: (0, 0)),               # depthwise weights
            pl.BlockSpec((C, C), lambda n: (0, 0)),                   # pointwise weights
        ],
        out_specs=pl.BlockSpec((1, C, HW), lambda n: (n, 0, 0)),
        compiler_params=pltpu.CompilerParams(
            dimension_semantics=("parallel",),
            vmem_limit_bytes=16 * 1024 * 1024),
    )(weights, x, row_idx, col_idx, icnt_w2, dw_col, pw_k)

    return out.reshape(N, C, H, W)                                    # free reshape


def reference_mixed_op(x_nchw, weights, dw_w, pw_w):
    """Pure-JAX reference (lax.reduce_window / conv_general_dilated)."""
    N, C, H, W = x_nchw.shape
    x = x_nchw.astype(jnp.float32)
    pad4 = ((0, 0), (0, 0), (1, 1), (1, 1))
    neg = float(jnp.finfo(jnp.float32).min)

    mx = lax.reduce_window(x, neg, lax.max, (1, 1, 3, 3), (1, 1, 1, 1), pad4)
    sm = lax.reduce_window(x, 0.0, lax.add, (1, 1, 3, 3), (1, 1, 1, 1), pad4)
    cnt = lax.reduce_window(jnp.ones((1, 1, H, W), jnp.float32), 0.0, lax.add,
                            (1, 1, 3, 3), (1, 1, 1, 1), pad4)
    avg = sm / cnt

    dn = ("NCHW", "OIHW", "NCHW")
    dw = lax.conv_general_dilated(jnp.maximum(x, 0.0), dw_w, (1, 1), ((1, 1), (1, 1)),
                                  dimension_numbers=dn, feature_group_count=C,
                                  precision=lax.Precision.HIGHEST)
    pw = lax.conv_general_dilated(dw, pw_w, (1, 1), ((0, 0), (0, 0)),
                                  dimension_numbers=dn,
                                  precision=lax.Precision.HIGHEST)
    conv = pw * (1.0 / jnp.sqrt(1.0 + _BN_EPS))

    # weights[0] is 'none' (zero op)
    return weights[1] * x + weights[2] * avg + weights[3] * mx + weights[4] * conv


if __name__ == "__main__":
    key = jax.random.PRNGKey(0)
    N, C, H, W = 2, 16, 16, 16
    k1, k2, k3, k4 = jax.random.split(key, 4)

    x = jax.random.normal(k1, (N, C, H, W), jnp.float32)
    weights = jax.nn.softmax(jax.random.normal(k2, (NUM_OPS,), jnp.float32))
    dw_w = 0.1 * jax.random.normal(k3, (C, 1, 3, 3), jnp.float32)   # depthwise conv weight
    pw_w = 0.1 * jax.random.normal(k4, (C, C, 1, 1), jnp.float32)   # pointwise conv weight

    out = jax.block_until_ready(compressed_mixed_op(x, weights, dw_w, pw_w))
    ref = reference_mixed_op(x, weights, dw_w, pw_w)

    assert out.shape == (N, C, H, W)
    max_err = float(jnp.max(jnp.abs(out - ref)))
    assert jnp.allclose(out, ref, rtol=1e-3, atol=1e-3), f"max abs err = {max_err}"
    print("KERNEL_OK")
</pallas_src>

<mosaic_0001>
module attributes {stable_mosaic.version = 11 : i64} {
  func.func @_mixed_op_kernel(%arg0: i32, %arg1: memref<5xf32, #tpu.memory_space<smem>>, %arg2: memref<1x16x256xf32, #tpu.memory_space<vmem>>, %arg3: memref<1x256xf32, #tpu.memory_space<vmem>>, %arg4: memref<1x256xf32, #tpu.memory_space<vmem>>, %arg5: memref<1x256xf32, #tpu.memory_space<vmem>>, %arg6: memref<144x1xf32, #tpu.memory_space<vmem>>, %arg7: memref<16x16xbf16, #tpu.memory_space<vmem>>, %arg8: memref<1x16x256xf32, #tpu.memory_space<vmem>>) attributes {dimension_semantics = [#tpu.dimension_semantics<parallel>], iteration_bounds = array<i64: 2>, scalar_prefetch = 0 : i64, scratch_operands = 0 : i64, tpu.core_type = #tpu.core_type<tc>, window_params = [{transform_indices = @transform_0, window_bounds = array<i64: 5>}, {transform_indices = @transform_1, window_bounds = array<i64: 1, 16, 256>}, {pipeline_mode = #tpu.pipeline_mode<synchronous>, transform_indices = @transform_2, window_bounds = array<i64: 1, 256>}, {pipeline_mode = #tpu.pipeline_mode<synchronous>, transform_indices = @transform_3, window_bounds = array<i64: 1, 256>}, {pipeline_mode = #tpu.pipeline_mode<synchronous>, transform_indices = @transform_4, window_bounds = array<i64: 1, 256>}, {pipeline_mode = #tpu.pipeline_mode<synchronous>, transform_indices = @transform_5, window_bounds = array<i64: 144, 1>}, {pipeline_mode = #tpu.pipeline_mode<synchronous>, transform_indices = @transform_6, window_bounds = array<i64: 16, 16>}, {transform_indices = @transform_7, window_bounds = array<i64: 1, 16, 256>}]} {
    %c0 = arith.constant 0 : index
    %c0_0 = arith.constant 0 : index
    %c0_1 = arith.constant 0 : index
    %0 = vector.load %arg2[%c0, %c0_0, %c0_1] : memref<1x16x256xf32, #tpu.memory_space<vmem>>, vector<1x16x256xf32>
    %1 = vector.shape_cast %0 : vector<1x16x256xf32> to vector<16x256xf32>
    %c0_2 = arith.constant 0 : index
    %c0_3 = arith.constant 0 : index
    %2 = vector.load %arg3[%c0_2, %c0_3] : memref<1x256xf32, #tpu.memory_space<vmem>>, vector<1x256xf32>
    %c0_4 = arith.constant 0 : index
    %c0_5 = arith.constant 0 : index
    %3 = vector.load %arg4[%c0_4, %c0_5] : memref<1x256xf32, #tpu.memory_space<vmem>>, vector<1x256xf32>
    %cst = arith.constant 1.000000e+00 : f32
    %4 = vector.broadcast %cst : f32 to vector<1x256xf32>
    %5 = arith.cmpf oge, %2, %4 : vector<1x256xf32>
    %cst_6 = arith.constant 1.600000e+01 : f32
    %6 = vector.broadcast %cst_6 : f32 to vector<1x256xf32>
    %7 = arith.cmpf ole, %2, %6 : vector<1x256xf32>
    %8 = arith.andi %5, %7 : vector<1x256xi1>
    %cst_7 = arith.constant 0.000000e+00 : f32
    %9 = vector.broadcast %cst_7 : f32 to vector<1x256xf32>
    %10 = arith.cmpf oge, %2, %9 : vector<1x256xf32>
    %cst_8 = arith.constant 1.500000e+01 : f32
    %11 = vector.broadcast %cst_8 : f32 to vector<1x256xf32>
    %12 = arith.cmpf ole, %2, %11 : vector<1x256xf32>
    %13 = arith.andi %10, %12 : vector<1x256xi1>
    %cst_9 = arith.constant -1.000000e+00 : f32
    %14 = vector.broadcast %cst_9 : f32 to vector<1x256xf32>
    %15 = arith.cmpf oge, %2, %14 : vector<1x256xf32>
    %cst_10 = arith.constant 1.400000e+01 : f32
    %16 = vector.broadcast %cst_10 : f32 to vector<1x256xf32>
    %17 = arith.cmpf ole, %2, %16 : vector<1x256xf32>
    %18 = arith.andi %15, %17 : vector<1x256xi1>
    %cst_11 = arith.constant 1.000000e+00 : f32
    %19 = vector.broadcast %cst_11 : f32 to vector<1x256xf32>
    %20 = arith.cmpf oge, %3, %19 : vector<1x256xf32>
    %cst_12 = arith.constant 1.600000e+01 : f32
    %21 = vector.broadcast %cst_12 : f32 to vector<1x256xf32>
    %22 = arith.cmpf ole, %3, %21 : vector<1x256xf32>
    %23 = arith.andi %20, %22 : vector<1x256xi1>
    %cst_13 = arith.constant 0.000000e+00 : f32
    %24 = vector.broadcast %cst_13 : f32 to vector<1x256xf32>
    %25 = arith.cmpf oge, %3, %24 : vector<1x256xf32>
    %cst_14 = arith.constant 1.500000e+01 : f32
    %26 = vector.broadcast %cst_14 : f32 to vector<1x256xf32>
    %27 = arith.cmpf ole, %3, %26 : vector<1x256xf32>
    %28 = arith.andi %25, %27 : vector<1x256xi1>
    %cst_15 = arith.constant -1.000000e+00 : f32
    %29 = vector.broadcast %cst_15 : f32 to vector<1x256xf32>
    %30 = arith.cmpf oge, %3, %29 : vector<1x256xf32>
    %cst_16 = arith.constant 1.400000e+01 : f32
    %31 = vector.broadcast %cst_16 : f32 to vector<1x256xf32>
    %32 = arith.cmpf ole, %3, %31 : vector<1x256xf32>
    %33 = arith.andi %30, %32 : vector<1x256xi1>
    %cst_17 = arith.constant 0.000000e+00 : f32
    %34 = vector.broadcast %cst_17 : f32 to vector<16x256xf32>
    %cst_18 = arith.constant -3.40282347E+38 : f32
    %35 = vector.broadcast %cst_18 : f32 to vector<16x256xf32>
    %cst_19 = arith.constant 0.000000e+00 : f32
    %36 = vector.broadcast %cst_19 : f32 to vector<16x256xf32>
    %c17_i32 = arith.constant 17 : i32
    %37 = tpu.dynamic_rotate %1 by %c17_i32 dim 1 : vector<16x256xf32>, i32 -> vector<16x256xf32>
    %38 = arith.andi %8, %23 : vector<1x256xi1>
    %39 = arith.extui %38 : vector<1x256xi1> to vector<1x256xi32>
    %40 = arith.sitofp %39 : vector<1x256xi32> to vector<1x256xf32>
    %41 = vector.broadcast %40 : vector<1x256xf32> to vector<16x256xf32>
    %42 = arith.mulf %37, %41 : vector<16x256xf32>
    %43 = arith.addf %34, %42 : vector<16x256xf32>
    %cst_20 = arith.constant -3.40282347E+38 : f32
    %44 = vector.shape_cast %38 : vector<1x256xi1> to vector<1x256xi1>
    %45 = vector.broadcast %44 : vector<1x256xi1> to vector<16x256xi1>
    %46 = vector.broadcast %cst_20 : f32 to vector<16x256xf32>
    %47 = arith.select %45, %37, %46 : vector<16x256xi1>, vector<16x256xf32>
    %48 = arith.maximumf %35, %47 : vector<16x256xf32>
    %cst_21 = arith.constant 0.000000e+00 : f32
    %49 = vector.broadcast %cst_21 : f32 to vector<16x256xf32>
    %50 = arith.maximumf %42, %49 : vector<16x256xf32>
    %c0_22 = arith.constant 0 : index
    %c0_23 = arith.constant 0 : index
    %51 = vector.load %arg6[%c0_22, %c0_23] : memref<144x1xf32, #tpu.memory_space<vmem>>, vector<16x1xf32>
    %52 = vector.broadcast %51 : vector<16x1xf32> to vector<16x256xf32>
    %53 = arith.mulf %50, %52 : vector<16x256xf32>
    %54 = arith.addf %36, %53 : vector<16x256xf32>
    %c16_i32 = arith.constant 16 : i32
    %55 = tpu.dynamic_rotate %1 by %c16_i32 dim 1 : vector<16x256xf32>, i32 -> vector<16x256xf32>
    %56 = arith.andi %8, %28 : vector<1x256xi1>
    %57 = arith.extui %56 : vector<1x256xi1> to vector<1x256xi32>
    %58 = arith.sitofp %57 : vector<1x256xi32> to vector<1x256xf32>
    %59 = vector.broadcast %58 : vector<1x256xf32> to vector<16x256xf32>
    %60 = arith.mulf %55, %59 : vector<16x256xf32>
    %61 = arith.addf %43, %60 : vector<16x256xf32>
    %cst_24 = arith.constant -3.40282347E+38 : f32
    %62 = vector.shape_cast %56 : vector<1x256xi1> to vector<1x256xi1>
    %63 = vector.broadcast %62 : vector<1x256xi1> to vector<16x256xi1>
    %64 = vector.broadcast %cst_24 : f32 to vector<16x256xf32>
    %65 = arith.select %63, %55, %64 : vector<16x256xi1>, vector<16x256xf32>
    %66 = arith.maximumf %48, %65 : vector<16x256xf32>
    %cst_25 = arith.constant 0.000000e+00 : f32
    %67 = vector.broadcast %cst_25 : f32 to vector<16x256xf32>
    %68 = arith.maximumf %60, %67 : vector<16x256xf32>
    %c16 = arith.constant 16 : index
    %c0_26 = arith.constant 0 : index
    %69 = vector.load %arg6[%c16, %c0_26] : memref<144x1xf32, #tpu.memory_space<vmem>>, vector<16x1xf32>
    %70 = vector.broadcast %69 : vector<16x1xf32> to vector<16x256xf32>
    %71 = arith.mulf %68, %70 : vector<16x256xf32>
    %72 = arith.addf %54, %71 : vector<16x256xf32>
    %c15_i32 = arith.constant 15 : i32
    %73 = tpu.dynamic_rotate %1 by %c15_i32 dim 1 : vector<16x256xf32>, i32 -> vector<16x256xf32>
    %74 = arith.andi %8, %33 : vector<1x256xi1>
    %75 = arith.extui %74 : vector<1x256xi1> to vector<1x256xi32>
    %76 = arith.sitofp %75 : vector<1x256xi32> to vector<1x256xf32>
    %77 = vector.broadcast %76 : vector<1x256xf32> to vector<16x256xf32>
    %78 = arith.mulf %73, %77 : vector<16x256xf32>
    %79 = arith.addf %61, %78 : vector<16x256xf32>
    %cst_27 = arith.constant -3.40282347E+38 : f32
    %80 = vector.shape_cast %74 : vector<1x256xi1> to vector<1x256xi1>
    %81 = vector.broadcast %80 : vector<1x256xi1> to vector<16x256xi1>
    %82 = vector.broadcast %cst_27 : f32 to vector<16x256xf32>
    %83 = arith.select %81, %73, %82 : vector<16x256xi1>, vector<16x256xf32>
    %84 = arith.maximumf %66, %83 : vector<16x256xf32>
    %cst_28 = arith.constant 0.000000e+00 : f32
    %85 = vector.broadcast %cst_28 : f32 to vector<16x256xf32>
    %86 = arith.maximumf %78, %85 : vector<16x256xf32>
    %c32 = arith.constant 32 : index
    %c0_29 = arith.constant 0 : index
    %87 = vector.load %arg6[%c32, %c0_29] : memref<144x1xf32, #tpu.memory_space<vmem>>, vector<16x1xf32>
    %88 = vector.broadcast %87 : vector<16x1xf32> to vector<16x256xf32>
    %89 = arith.mulf %86, %88 : vector<16x256xf32>
    %90 = arith.addf %72, %89 : vector<16x256xf32>
    %c1_i32 = arith.constant 1 : i32
    %91 = tpu.dynamic_rotate %1 by %c1_i32 dim 1 : vector<16x256xf32>, i32 -> vector<16x256xf32>
    %92 = arith.andi %13, %23 : vector<1x256xi1>
    %93 = arith.extui %92 : vector<1x256xi1> to vector<1x256xi32>
    %94 = arith.sitofp %93 : vector<1x256xi32> to vector<1x256xf32>
    %95 = vector.broadcast %94 : vector<1x256xf32> to vector<16x256xf32>
    %96 = arith.mulf %91, %95 : vector<16x256xf32>
    %97 = arith.addf %79, %96 : vector<16x256xf32>
    %cst_30 = arith.constant -3.40282347E+38 : f32
    %98 = vector.shape_cast %92 : vector<1x256xi1> to vector<1x256xi1>
    %99 = vector.broadcast %98 : vector<1x256xi1> to vector<16x256xi1>
    %100 = vector.broadcast %cst_30 : f32 to vector<16x256xf32>
    %101 = arith.select %99, %91, %100 : vector<16x256xi1>, vector<16x256xf32>
    %102 = arith.maximumf %84, %101 : vector<16x256xf32>
    %cst_31 = arith.constant 0.000000e+00 : f32
    %103 = vector.broadcast %cst_31 : f32 to vector<16x256xf32>
    %104 = arith.maximumf %96, %103 : vector<16x256xf32>
    %c48 = arith.constant 48 : index
    %c0_32 = arith.constant 0 : index
    %105 = vector.load %arg6[%c48, %c0_32] : memref<144x1xf32, #tpu.memory_space<vmem>>, vector<16x1xf32>
    %106 = vector.broadcast %105 : vector<16x1xf32> to vector<16x256xf32>
    %107 = arith.mulf %104, %106 : vector<16x256xf32>
    %108 = arith.addf %90, %107 : vector<16x256xf32>
    %109 = arith.andi %13, %28 : vector<1x256xi1>
    %110 = arith.extui %109 : vector<1x256xi1> to vector<1x256xi32>
    %111 = arith.sitofp %110 : vector<1x256xi32> to vector<1x256xf32>
    %112 = vector.broadcast %111 : vector<1x256xf32> to vector<16x256xf32>
    %113 = arith.mulf %1, %112 : vector<16x256xf32>
    %114 = arith.addf %97, %113 : vector<16x256xf32>
    %cst_33 = arith.constant -3.40282347E+38 : f32
    %115 = vector.shape_cast %109 : vector<1x256xi1> to vector<1x256xi1>
    %116 = vector.broadcast %115 : vector<1x256xi1> to vector<16x256xi1>
    %117 = vector.broadcast %cst_33 : f32 to vector<16x256xf32>
    %118 = arith.select %116, %1, %117 : vector<16x256xi1>, vector<16x256xf32>
    %119 = arith.maximumf %102, %118 : vector<16x256xf32>
    %cst_34 = arith.constant 0.000000e+00 : f32
    %120 = vector.broadcast %cst_34 : f32 to vector<16x256xf32>
    %121 = arith.maximumf %113, %120 : vector<16x256xf32>
    %c64 = arith.constant 64 : index
    %c0_35 = arith.constant 0 : index
    %122 = vector.load %arg6[%c64, %c0_35] : memref<144x1xf32, #tpu.memory_space<vmem>>, vector<16x1xf32>
    %123 = vector.broadcast %122 : vector<16x1xf32> to vector<16x256xf32>
    %124 = arith.mulf %121, %123 : vector<16x256xf32>
    %125 = arith.addf %108, %124 : vector<16x256xf32>
    %c255_i32 = arith.constant 255 : i32
    %126 = tpu.dynamic_rotate %1 by %c255_i32 dim 1 : vector<16x256xf32>, i32 -> vector<16x256xf32>
    %127 = arith.andi %13, %33 : vector<1x256xi1>
    %128 = arith.extui %127 : vector<1x256xi1> to vector<1x256xi32>
    %129 = arith.sitofp %128 : vector<1x256xi32> to vector<1x256xf32>
    %130 = vector.broadcast %129 : vector<1x256xf32> to vector<16x256xf32>
    %131 = arith.mulf %126, %130 : vector<16x256xf32>
    %132 = arith.addf %114, %131 : vector<16x256xf32>
    %cst_36 = arith.constant -3.40282347E+38 : f32
    %133 = vector.shape_cast %127 : vector<1x256xi1> to vector<1x256xi1>
    %134 = vector.broadcast %133 : vector<1x256xi1> to vector<16x256xi1>
    %135 = vector.broadcast %cst_36 : f32 to vector<16x256xf32>
    %136 = arith.select %134, %126, %135 : vector<16x256xi1>, vector<16x256xf32>
    %137 = arith.maximumf %119, %136 : vector<16x256xf32>
    %cst_37 = arith.constant 0.000000e+00 : f32
    %138 = vector.broadcast %cst_37 : f32 to vector<16x256xf32>
    %139 = arith.maximumf %131, %138 : vector<16x256xf32>
    %c80 = arith.constant 80 : index
    %c0_38 = arith.constant 0 : index
    %140 = vector.load %arg6[%c80, %c0_38] : memref<144x1xf32, #tpu.memory_space<vmem>>, vector<16x1xf32>
    %141 = vector.broadcast %140 : vector<16x1xf32> to vector<16x256xf32>
    %142 = arith.mulf %139, %141 : vector<16x256xf32>
    %143 = arith.addf %125, %142 : vector<16x256xf32>
    %c241_i32 = arith.constant 241 : i32
    %144 = tpu.dynamic_rotate %1 by %c241_i32 dim 1 : vector<16x256xf32>, i32 -> vector<16x256xf32>
    %145 = arith.andi %18, %23 : vector<1x256xi1>
    %146 = arith.extui %145 : vector<1x256xi1> to vector<1x256xi32>
    %147 = arith.sitofp %146 : vector<1x256xi32> to vector<1x256xf32>
    %148 = vector.broadcast %147 : vector<1x256xf32> to vector<16x256xf32>
    %149 = arith.mulf %144, %148 : vector<16x256xf32>
    %150 = arith.addf %132, %149 : vector<16x256xf32>
    %cst_39 = arith.constant -3.40282347E+38 : f32
    %151 = vector.shape_cast %145 : vector<1x256xi1> to vector<1x256xi1>
    %152 = vector.broadcast %151 : vector<1x256xi1> to vector<16x256xi1>
    %153 = vector.broadcast %cst_39 : f32 to vector<16x256xf32>
    %154 = arith.select %152, %144, %153 : vector<16x256xi1>, vector<16x256xf32>
    %155 = arith.maximumf %137, %154 : vector<16x256xf32>
    %cst_40 = arith.constant 0.000000e+00 : f32
    %156 = vector.broadcast %cst_40 : f32 to vector<16x256xf32>
    %157 = arith.maximumf %149, %156 : vector<16x256xf32>
    %c96 = arith.constant 96 : index
    %c0_41 = arith.constant 0 : index
    %158 = vector.load %arg6[%c96, %c0_41] : memref<144x1xf32, #tpu.memory_space<vmem>>, vector<16x1xf32>
    %159 = vector.broadcast %158 : vector<16x1xf32> to vector<16x256xf32>
    %160 = arith.mulf %157, %159 : vector<16x256xf32>
    %161 = arith.addf %143, %160 : vector<16x256xf32>
    %c240_i32 = arith.constant 240 : i32
    %162 = tpu.dynamic_rotate %1 by %c240_i32 dim 1 : vector<16x256xf32>, i32 -> vector<16x256xf32>
    %163 = arith.andi %18, %28 : vector<1x256xi1>
    %164 = arith.extui %163 : vector<1x256xi1> to vector<1x256xi32>
    %165 = arith.sitofp %164 : vector<1x256xi32> to vector<1x256xf32>
    %166 = vector.broadcast %165 : vector<1x256xf32> to vector<16x256xf32>
    %167 = arith.mulf %162, %166 : vector<16x256xf32>
    %168 = arith.addf %150, %167 : vector<16x256xf32>
    %cst_42 = arith.constant -3.40282347E+38 : f32
    %169 = vector.shape_cast %163 : vector<1x256xi1> to vector<1x256xi1>
    %170 = vector.broadcast %169 : vector<1x256xi1> to vector<16x256xi1>
    %171 = vector.broadcast %cst_42 : f32 to vector<16x256xf32>
    %172 = arith.select %170, %162, %171 : vector<16x256xi1>, vector<16x256xf32>
    %173 = arith.maximumf %155, %172 : vector<16x256xf32>
    %cst_43 = arith.constant 0.000000e+00 : f32
    %174 = vector.broadcast %cst_43 : f32 to vector<16x256xf32>
    %175 = arith.maximumf %167, %174 : vector<16x256xf32>
    %c112 = arith.constant 112 : index
    %c0_44 = arith.constant 0 : index
    %176 = vector.load %arg6[%c112, %c0_44] : memref<144x1xf32, #tpu.memory_space<vmem>>, vector<16x1xf32>
    %177 = vector.broadcast %176 : vector<16x1xf32> to vector<16x256xf32>
    %178 = arith.mulf %175, %177 : vector<16x256xf32>
    %179 = arith.addf %161, %178 : vector<16x256xf32>
    %c239_i32 = arith.constant 239 : i32
    %180 = tpu.dynamic_rotate %1 by %c239_i32 dim 1 : vector<16x256xf32>, i32 -> vector<16x256xf32>
    %181 = arith.andi %18, %33 : vector<1x256xi1>
    %182 = arith.extui %181 : vector<1x256xi1> to vector<1x256xi32>
    %183 = arith.sitofp %182 : vector<1x256xi32> to vector<1x256xf32>
    %184 = vector.broadcast %183 : vector<1x256xf32> to vector<16x256xf32>
    %185 = arith.mulf %180, %184 : vector<16x256xf32>
    %186 = arith.addf %168, %185 : vector<16x256xf32>
    %cst_45 = arith.constant -3.40282347E+38 : f32
    %187 = vector.shape_cast %181 : vector<1x256xi1> to vector<1x256xi1>
    %188 = vector.broadcast %187 : vector<1x256xi1> to vector<16x256xi1>
    %189 = vector.broadcast %cst_45 : f32 to vector<16x256xf32>
    %190 = arith.select %188, %180, %189 : vector<16x256xi1>, vector<16x256xf32>
    %191 = arith.maximumf %173, %190 : vector<16x256xf32>
    %cst_46 = arith.constant 0.000000e+00 : f32
    %192 = vector.broadcast %cst_46 : f32 to vector<16x256xf32>
    %193 = arith.maximumf %185, %192 : vector<16x256xf32>
    %c128 = arith.constant 128 : index
    %c0_47 = arith.constant 0 : index
    %194 = vector.load %arg6[%c128, %c0_47] : memref<144x1xf32, #tpu.memory_space<vmem>>, vector<16x1xf32>
    %195 = vector.broadcast %194 : vector<16x1xf32> to vector<16x256xf32>
    %196 = arith.mulf %193, %195 : vector<16x256xf32>
    %197 = arith.addf %179, %196 : vector<16x256xf32>
    %c0_48 = arith.constant 0 : index
    %c0_49 = arith.constant 0 : index
    %198 = vector.load %arg7[%c0_48, %c0_49] : memref<16x16xbf16, #tpu.memory_space<vmem>>, vector<16x16xbf16>
    %199 = arith.truncf %197 : vector<16x256xf32> to vector<16x256xbf16>
    %cst_50 = arith.constant dense<0.000000e+00> : vector<16x256xf32>
    %200 = tpu.matmul %198, %199, %cst_50 {dimension_numbers = #tpu.dot_dimension_numbers<[1], [0], [0], [1], [0, 0, 1, 1], [], []>} : vector<16x16xbf16>, vector<16x256xbf16>, vector<16x256xf32> -> vector<16x256xf32>
    %c1 = arith.constant 1 : index
    %201 = memref.load %arg1[%c1] : memref<5xf32, #tpu.memory_space<smem>>
    %202 = vector.broadcast %201 : f32 to vector<16x256xf32>
    %203 = arith.mulf %202, %1 : vector<16x256xf32>
    %c0_51 = arith.constant 0 : index
    %c0_52 = arith.constant 0 : index
    %204 = vector.load %arg5[%c0_51, %c0_52] : memref<1x256xf32, #tpu.memory_space<vmem>>, vector<1x256xf32>
    %205 = vector.broadcast %204 : vector<1x256xf32> to vector<16x256xf32>
    %206 = arith.mulf %186, %205 : vector<16x256xf32>
    %207 = arith.addf %203, %206 : vector<16x256xf32>
    %c3 = arith.constant 3 : index
    %208 = memref.load %arg1[%c3] : memref<5xf32, #tpu.memory_space<smem>>
    %209 = vector.broadcast %208 : f32 to vector<16x256xf32>
    %210 = arith.mulf %209, %191 : vector<16x256xf32>
    %211 = arith.addf %207, %210 : vector<16x256xf32>
    %212 = arith.addf %211, %200 : vector<16x256xf32>
    %c0_53 = arith.constant 0 : index
    %c0_54 = arith.constant 0 : index
    %c0_55 = arith.constant 0 : index
    %213 = vector.load %arg8[%c0_53, %c0_54, %c0_55] : memref<1x16x256xf32, #tpu.memory_space<vmem>>, vector<1x16x256xf32>
    %214 = vector.shape_cast %213 : vector<1x16x256xf32> to vector<16x256xf32>
    %215 = vector.shape_cast %212 : vector<16x256xf32> to vector<1x16x256xf32>
    tpu.vector_store %arg8[%c0_53, %c0_54, %c0_55], %215 {strides = array<i32>} : memref<1x16x256xf32, #tpu.memory_space<vmem>>, vector<1x16x256xf32>,
    return
  }
  func.func @transform_0(%arg0: i32) -> i32 {
    %c0_i32 = arith.constant 0 : i32
    %c0_i32_0 = arith.constant 0 : i32
    return %c0_i32 : i32
  }
  func.func @transform_1(%arg0: i32) -> (i32, i32, i32) {
    %c0_i32 = arith.constant 0 : i32
    %c0_i32_0 = arith.constant 0 : i32
    %c0_i32_1 = arith.constant 0 : i32
    return %arg0, %c0_i32, %c0_i32_0 : i32, i32, i32
  }
  func.func @transform_2(%arg0: i32) -> (i32, i32) {
    %c0_i32 = arith.constant 0 : i32
    %c0_i32_0 = arith.constant 0 : i32
    %c0_i32_1 = arith.constant 0 : i32
    return %c0_i32, %c0_i32_0 : i32, i32
  }
  func.func @transform_3(%arg0: i32) -> (i32, i32) {
    %c0_i32 = arith.constant 0 : i32
    %c0_i32_0 = arith.constant 0 : i32
    %c0_i32_1 = arith.constant 0 : i32
    return %c0_i32, %c0_i32_0 : i32, i32
  }
  func.func @transform_4(%arg0: i32) -> (i32, i32) {
    %c0_i32 = arith.constant 0 : i32
    %c0_i32_0 = arith.constant 0 : i32
    %c0_i32_1 = arith.constant 0 : i32
    return %c0_i32, %c0_i32_0 : i32, i32
  }
  func.func @transform_5(%arg0: i32) -> (i32, i32) {
    %c0_i32 = arith.constant 0 : i32
    %c0_i32_0 = arith.constant 0 : i32
    %c0_i32_1 = arith.constant 0 : i32
    return %c0_i32, %c0_i32_0 : i32, i32
  }
  func.func @transform_6(%arg0: i32) -> (i32, i32) {
    %c0_i32 = arith.constant 0 : i32
    %c0_i32_0 = arith.constant 0 : i32
    %c0_i32_1 = arith.constant 0 : i32
    return %c0_i32, %c0_i32_0 : i32, i32
  }
  func.func @transform_7(%arg0: i32) -> (i32, i32, i32) {
    %c0_i32 = arith.constant 0 : i32
    %c0_i32_0 = arith.constant 0 : i32
    %c0_i32_1 = arith.constant 0 : i32
    return %arg0, %c0_i32, %c0_i32_0 : i32, i32, i32
  }
}

</mosaic_0001>

<bundles_post_ra>
// kernel: compressed_mixed_op.1
= control target key start
LH: loop header
LB: loop body
LE: loop exit
PB: predicated region body
PF: predicated region fallthrough
CT: control target
= control target key end

     0   :  { %12 = vsyncpa [#allocation3], 0  ;;  %s1305_s24 = smov 0   ;;  %s2038_s0 = inlined_call_operand.vmem [shape: f32[5], index: 0, kind: input, shape index: {}]   ;;  %s2039_s1 = inlined_call_operand.vmem [shape: f32[2,16,256], index: 1, kind: input, shape index: {}]   ;;  %s2040_s2 = inlined_call_operand.vmem [shape: f32[1,256], index: 2, kind: input, shape index: {}]   ;;  %s2041_s3 = inlined_call_operand.vmem [shape: f32[1,256], index: 3, kind: input, shape index: {}]   ;;  %s2042_s4 = inlined_call_operand.vmem [shape: f32[1,256], index: 4, kind: input, shape index: {}]   ;;  %s2043_s5 = inlined_call_operand.vmem [shape: f32[144,1], index: 5, kind: input, shape index: {}]   ;;  %s2044_s6 = inlined_call_operand.vmem [shape: bf16[16,16], index: 6, kind: input, shape index: {}]   ;;  %s2045_s7 = inlined_call_operand.vmem [shape: f32[2,16,256], index: 7, kind: output, shape index: {}]  }
   0x1 LB: > { %s1311_s25 = sadd.s32 4294967295, %s1252_s24   ;;  %p1169_p0 = scmp.ge.s32.totalorder %s1252_s24, 1  ;;  %s1252_s24 = sphi %s1305_s24, %s18_s24  }
   0x2   : > { %p201_p1 = scmp.lt.s32.totalorder %s1252_s24, 3  ;;  %s214_s28 = sshll.u32 %s2038_s0, 4  ;;  %s215_s28 = int_to_ptr.vmem [resolvable:$true] %s214_s28 }
   0x3   : > { %p1203_p3 = scmp.eq.s32.totalorder %s1311_s25, 0  ;;  %s1227_s30 = scalar_lea.vmem %s215_s28, 16 }
   0x4   : > { %p1318_p2 = pnand %p1169_p0, %p201_p1  ;;  %p1228_p6 = scmp.ne.s32.totalorder %s215_s28, %s1227_s30 }
   0x5   : > { %p1235_p10 = scmp.lt.s32.totalorder %s215_s28, %s215_s28  ;;  %p1236_p11 = scmp.lt.s32.totalorder %s1227_s30, %s1227_s30 }
   0x6   : > { %p1199_p4 = pneg %p1318_p2 }
   0x7   : > { %p1237_p12 = por %p1236_p11, %p1235_p10 }
   0x8   : > { %p1200_p5 = pnand %p1203_p3, %p1199_p4 }
   0xa   : > { %p1229_p7 = pneg %p1200_p5 }
   0xc   : > { %p1230_p8 = pnand %p1229_p7, %p1228_p6 }
   0xe   : > { %p1231_p9 = pneg %p1230_p8 }
  0x10   : > { %p1238_p13 = pnand %p1237_p12, %p1231_p9 }
  0x12   : > { %1241 = shalt.err (!%p1238_p13)
}
  0x13   : > { %s1254_s8 = smov [#allocation2]   ;;  %250 = sbr.rel (%p1318_p2) target bundleno = 490 (0x1ea), region = 48 }
  0x14   : > { %1202 = dma.vmem_to_smem (!%p1200_p5), %s215_s28, 16, %s1254_s8, [#allocation3]  }
  0x1a   : > { %1247 = dma.done.wait (%p1203_p3), [#allocation3], 16  }
  0x1b   : > { %1249 = vsyncadd (%p1203_p3), [#allocation3], 4294967280 }
  0x1c   : > { %256 = sfence }
  0x1d   : > { %v454_v0 = vld [vmem:[%s2043_s5 + $0x10] sm:$0xff]  ;;  %v377_v1 = vld [vmem:[%s2043_s5] sm:$0xff]  ;;  %p283_p0 = scmp.lt.s32.totalorder %s1311_s25, 1  ;;  %v1255_v2 = vmov 0   ;;  %v455_v3 = vld [vmem:[%s2043_s5 + $0x18] sm:$0xff]  ;;  %s1256_s21 = smov 17   ;;  %v326_v25 = vlaneseq }
  0x1e   : > { %1225 = vset.pattern.permute.xlu1 %v1255_v2  ;;  %1224 = vset.pattern.permute.xlu0 %v1255_v2  ;;  %v378_v4 = vld [vmem:[%s2043_s5 + $0x8] sm:$0xff]  ;;  %s1257_s22 = smov 16   ;;  %v531_v10 = vld [vmem:[%s2043_s5 + $0x20] sm:$0xff]  ;;  %s1258_s29 = smov 15   ;;  %v609_v11 = vld [vmem:[%s2043_s5 + $0x38] sm:$0xff]  ;;  %v1264_v38 = vmov 0.0  }
  0x1f   : > { %458 = vperm.xlu1 %1225, %v454_v0   ;;  %381 = vperm.xlu0 %1224, %v377_v1   ;;  %s2096_s25 = smov (!%p283_p0, %s1311_s25), 1  ;;  %v532_v9 = vld [vmem:[%s2043_s5 + $0x28] sm:$0xff]  ;;  %v608_v12 = vld [vmem:[%s2043_s5 + $0x30] sm:$0xff]  ;;  %s1259_s11 = smov 1   ;;  %v672_v14 = vld [vmem:[%s2043_s5 + $0x40] sm:$0xff]  ;;  %v338_v28 = vshrl.u32 %v326_v25, 7 }
  0x20   : > { %1045 = vmatprep.mubr.bf16.mxu0 %v1255_v2  ;;  %s1193_s17 = sshll.u32 %s2096_s25, 5  ;;  %v673_v13 = vld [vmem:[%s2043_s5 + $0x48] sm:$0xff]  ;;  %v750_v15 = vld [vmem:[%s2043_s5 + $0x58] sm:$0xff]  ;;  %v749_v16 = vld [vmem:[%s2043_s5 + $0x50] sm:$0xff]  ;;  %s1261_s28 = smov 113   ;;  %v1479_v37 = vand.u32 127, %v326_v25 }
  0x21   : > { %s287_s20 = scalar_lea.vmem %s2039_s1, %s1193_s17  ;;  %v827_v17 = vld [vmem:[%s2043_s5 + $0x68] sm:$0xff]  ;;  %v826_v18 = vld [vmem:[%s2043_s5 + $0x60] sm:$0xff]  ;;  %v904_v19 = vld [vmem:[%s2043_s5 + $0x78] sm:$0xff]  ;;  %s1262_s10 = smov 112   ;;  %v1468_v32 = vsub.s32 0, %v338_v28  ;;  %v1470_v33 = vsub.s32 1, %v338_v28 }
  0x22   : > { %v1358_v5 = vld [vmem:[%s287_s20 + $0x10] sm:$0xff]  ;;  %v1360_v6 = vld [vmem:[%s287_s20] sm:$0xff]  ;;  %v1364_v7 = vld [vmem:[%s287_s20 + $0x18] sm:$0xff]  ;;  %s1263_s15 = smov 111   ;;  %vm328_vm13 = vcmp.lt.s32.totalorder %v1479_v37, 17  ;;  %s292_s8 = scalar_lea.vmem %s2045_s7, %s1193_s17 }
  0x23   : > { %463 = vperm.xlu1 %1225, %v455_v3   ;;  %386 = vperm.xlu0 %1224, %v378_v4   ;;  %v1366_v8 = vld [vmem:[%s287_s20 + $0x8] sm:$0xff]  ;;  %v903_v20 = vld [vmem:[%s2043_s5 + $0x70] sm:$0xff]  ;;  %v980_v22 = vld [vmem:[%s2043_s5 + $0x80] sm:$0xff] }
  0x24   : > { %v981_v21 = vld [vmem:[%s2043_s5 + $0x88] sm:$0xff]  ;;  %v1443_v23 = vld [vmem:[%s2040_s2] sm:$0x3] }
  0x25   : > { %v299_v24 = vld [vmem:[%s2041_s3] sm:$0x3]  ;;  %vm300_vm0 = vcmp.ge.f32.partialorder %v1443_v23, 1.0  ;;  %vm301_vm1 = vcmp.le.f32.partialorder %v1443_v23, 16.0 }
  0x26   : > { %vm309_vm2 = vcmp.ge.f32.partialorder %v299_v24, 1.0  ;;  %vm310_vm3 = vcmp.le.f32.partialorder %v299_v24, 16.0  ;;  %vm1450_vm4 = vmand %vm300_vm0, %vm301_vm1  ;;  %vm312_vm6 = vcmp.ge.f32.partialorder %v299_v24, 0.0  ;;  %vm313_vm7 = vcmp.le.f32.partialorder %v299_v24, 15.0 }
  0x27   : > { %320 = vrot.lane.b32.xlu1 %v1358_v5, %s1256_s21  ;;  %318 = vrot.lane.b32.xlu0 %v1360_v6, %s1256_s21  ;;  %vm1454_vm5 = vmand %vm309_vm2, %vm310_vm3  ;;  %vm315_vm11 = vcmp.ge.f32.partialorder %v299_v24, -1.0  ;;  %vm316_vm12 = vcmp.le.f32.partialorder %v299_v24, 14.0  ;;  %vm405_vm1 = vcmp.lt.s32.totalorder %v1479_v37, 16 }
  0x28   : > { %vm333_vm8 = vmand %vm1450_vm4, %vm1454_vm5 }
  0x29   : > { %vm1464_vm9 = vmand %vm312_vm6, %vm313_vm7  ;;  %v334_v36 = vsel %vm333_vm8, 1, %v1255_v2  ;;  %v1178_v39 = vsel %vm333_vm8, 1.0, %v1264_v38  ;;  %vm303_vm7 = vcmp.ge.f32.partialorder %v1443_v23, 0.0  ;;  %vm304_vm8 = vcmp.le.f32.partialorder %v1443_v23, 15.0 }
  0x2a   : > { %vm410_vm10 = vmand %vm1450_vm4, %vm1464_vm9  ;;  %v358_v40 = vrot.slane %v334_v36, %v1468_v32  ;;  %v362_v41 = vrot.slane %v334_v36, %v1470_v33  ;;  %v340_v46 = vrot.slane %v1178_v39, %v1468_v32  ;;  %v344_v47 = vrot.slane %v1178_v39, %v1470_v33 }
  0x2b   : > { %324 = vrot.lane.b32.xlu1 %v1364_v7, %s1256_s21  ;;  %322 = vrot.lane.b32.xlu0 %v1366_v8, %s1256_s21  ;;  %s1260_s21 = smov 127   ;;  %v411_v44 = vsel %vm410_vm10, 1, %v1255_v2  ;;  %v1179_v45 = vsel %vm410_vm10, 1.0, %v1264_v38  ;;  %vm1498_vm0 = vmand %vm315_vm11, %vm316_vm12  ;;  %vm482_vm11 = vcmp.lt.s32.totalorder %v1479_v37, 15 }
  0x2c   : > { %vm1489_vm14 = vcmp.eq.s32.totalorder %v358_v40, 1  ;;  %vm1493_vm15 = vcmp.eq.s32.totalorder %v362_v41, 1  ;;  %v435_v50 = vrot.slane %v411_v44, %v1468_v32  ;;  %v417_v54 = vrot.slane %v1179_v45, %v1468_v32  ;;  %vm487_vm2 = vmand %vm1450_vm4, %vm1498_vm0 }
  0x2d   : > { %v439_v55 = vrot.slane %v411_v44, %v1470_v33  ;;  %v421_v3 = vrot.slane %v1179_v45, %v1470_v33  ;;  %vm1564_vm4 = vmand %vm303_vm7, %vm304_vm8  ;;  %vm307_vm7 = vcmp.le.f32.partialorder %v1443_v23, 14.0 }
  0x2e   : > { %vm1514_vm3 = vcmp.eq.s32.totalorder %v435_v50, 1  ;;  %vm564_vm10 = vmand %vm1564_vm4, %vm1454_vm5 }
  0x2f   : > { %399 = vrot.lane.b32.xlu1 %v1358_v5, %s1257_s22  ;;  %397 = vrot.lane.b32.xlu0 %v1360_v6, %s1257_s22  ;;  %vm1522_vm6 = vcmp.eq.s32.totalorder %v439_v55, 1 }
  0x33   : > { %403 = vrot.lane.b32.xlu1 %v1364_v7, %s1257_s22  ;;  %401 = vrot.lane.b32.xlu0 %v1366_v8, %s1257_s22  ;;  %s1951_s22 = sld [smem:[#allocation2 + $0x3]] }
  0x37   : > { %540 = vperm.xlu1 %1225, %v532_v9   ;;  %535 = vperm.xlu0 %1224, %v531_v10  }
  0x3b   : > { %476 = vrot.lane.b32.xlu1 %v1358_v5, %s1258_s29  ;;  %474 = vrot.lane.b32.xlu0 %v1360_v6, %s1258_s29 }
  0x3f   : > { %480 = vrot.lane.b32.xlu1 %v1364_v7, %s1258_s29  ;;  %478 = vrot.lane.b32.xlu0 %v1366_v8, %s1258_s29 }
  0x43   : > { %617 = vperm.xlu1 %1225, %v609_v11   ;;  %612 = vperm.xlu0 %1224, %v608_v12  }
  0x47   : > { %553 = vrot.lane.b32.xlu1 %v1358_v5, %s1259_s11  ;;  %551 = vrot.lane.b32.xlu0 %v1360_v6, %s1259_s11 }
  0x4b   : > { %557 = vrot.lane.b32.xlu1 %v1364_v7, %s1259_s11  ;;  %555 = vrot.lane.b32.xlu0 %v1366_v8, %s1259_s11 }
  0x4f   : > { %681 = vperm.xlu1 %1225, %v673_v13   ;;  %676 = vperm.xlu0 %1224, %v672_v14  }
  0x53   : > { %758 = vperm.xlu1 %1225, %v750_v15   ;;  %753 = vperm.xlu0 %1224, %v749_v16  }
  0x57   : > { %694 = vrot.lane.b32.xlu1 %v1358_v5, %s1260_s21  ;;  %692 = vrot.lane.b32.xlu0 %v1360_v6, %s1260_s21 }
  0x5b   : > { %698 = vrot.lane.b32.xlu1 %v1364_v7, %s1260_s21  ;;  %696 = vrot.lane.b32.xlu0 %v1366_v8, %s1260_s21  ;;  %s1888_s21 = sld [smem:[#allocation2 + $0x1]] }
  0x5f   : > { %835 = vperm.xlu1 %1225, %v827_v17   ;;  %830 = vperm.xlu0 %1224, %v826_v18   ;;  %v488_v18 = vsel %vm487_vm2, 1, %v1255_v2 }
  0x60   : > { %v512_v4 = vrot.slane %v488_v18, %v1468_v32 }
  0x62   : > { %vm1579_vm12 = vcmp.eq.s32.totalorder %v512_v4, 1 }
  0x63   : > { %771 = vrot.lane.b32.xlu1 %v1358_v5, %s1261_s28  ;;  %769 = vrot.lane.b32.xlu0 %v1360_v6, %s1261_s28 }
  0x67   : > { %775 = vrot.lane.b32.xlu1 %v1364_v7, %s1261_s28  ;;  %773 = vrot.lane.b32.xlu0 %v1366_v8, %s1261_s28 }
  0x6b   : > { %912 = vperm.xlu1 %1225, %v904_v19   ;;  %907 = vperm.xlu0 %1224, %v903_v20  }
  0x6f   : > { %848 = vrot.lane.b32.xlu1 %v1358_v5, %s1262_s10  ;;  %846 = vrot.lane.b32.xlu0 %v1360_v6, %s1262_s10 }
  0x73   : > { %852 = vrot.lane.b32.xlu1 %v1364_v7, %s1262_s10  ;;  %850 = vrot.lane.b32.xlu0 %v1366_v8, %s1262_s10 }
  0x77   : > { %989 = vperm.xlu1 %1225, %v981_v21   ;;  %984 = vperm.xlu0 %1224, %v980_v22   ;;  %v1180_v21 = vsel %vm487_vm2, 1.0, %v1264_v38 }
  0x78   : > { %v494_v17 = vrot.slane %v1180_v21, %v1468_v32 }
  0x7b   : > { %925 = vrot.lane.b32.xlu1 %v1358_v5, %s1263_s15  ;;  %923 = vrot.lane.b32.xlu0 %v1360_v6, %s1263_s15 }
  0x7f   : > { %929 = vrot.lane.b32.xlu1 %v1364_v7, %s1263_s15  ;;  %927 = vrot.lane.b32.xlu0 %v1366_v8, %s1263_s15 }
  0x9e   : > { %v1458_v29 = vpop.permute.xlu1 %458  ;;  %v382_v30 = vpop.permute.xlu0 %381 }
  0xa2   : > { %v1472_v34 = vpop.permute.xlu1 %463  ;;  %v387_v35 = vpop.permute.xlu0 %386 }
  0xa6   : > { %v321_v42 = vpop.permute.xlu1 %320  ;;  %v319_v43 = vpop.permute.xlu0 %318 }
  0xaa   : > { %v325_v52 = vpop.permute.xlu1 %324  ;;  %v323_v53 = vpop.permute.xlu0 %322 }
  0xab   : > { %v330_v56 = vsel %vm328_vm13, %v321_v42, %v325_v52  ;;  %v332_v57 = vsel %vm328_vm13, %v325_v52, %v321_v42  ;;  %v329_v58 = vsel %vm328_vm13, %v319_v43, %v323_v53  ;;  %v331_v59 = vsel %vm328_vm13, %v323_v53, %v319_v43 }
  0xac   : > { %v349_v60 = vmul.f32 %v340_v46, %v332_v57  ;;  %v350_v61 = vmul.f32 %v344_v47, %v330_v56  ;;  %v367_v62 = vsel %vm1489_vm14, %v332_v57, -3.4028235e+38  ;;  %v368_v63 = vsel %vm1493_vm15, %v330_v56, -3.4028235e+38 }
  0xad   : > { %v347_v0 = vmul.f32 %v340_v46, %v331_v59  ;;  %v348_v1 = vmul.f32 %v344_v47, %v329_v58  ;;  %v365_v11 = vsel %vm1489_vm14, %v331_v59, -3.4028235e+38  ;;  %v366_v12 = vsel %vm1493_vm15, %v329_v58, -3.4028235e+38  ;;  %vm628_vm14 = vmand %vm1564_vm4, %vm1464_vm9 }
  0xae   : > { %v375_v9 = vmax.f32 %v349_v60, 0.0  ;;  %v376_v10 = vmax.f32 %v350_v61, 0.0  ;;  %v400_v13 = vpop.permute.xlu1 %399  ;;  %v398_v14 = vpop.permute.xlu0 %397  ;;  %v371_v22 = vmax.f32 %v367_v62, -3.4028235e+38  ;;  %v372_v28 = vmax.f32 %v368_v63, -3.4028235e+38 }
  0xaf   : > { %v373_v15 = vmax.f32 %v347_v0, 0.0  ;;  %v374_v16 = vmax.f32 %v348_v1, 0.0  ;;  %v369_v36 = vmax.f32 %v365_v11, -3.4028235e+38  ;;  %v370_v39 = vmax.f32 %v366_v12, -3.4028235e+38 }
  0xb0   : > { %v391_v19 = vmul.f32 %v387_v35, %v375_v9  ;;  %v392_v20 = vmul.f32 %v387_v35, %v376_v10  ;;  %v516_v11 = vrot.slane %v488_v18, %v1470_v33  ;;  %vm559_vm15 = vcmp.lt.s32.totalorder %v1479_v37, 1 }
  0xb1   : > { %v389_v24 = vmul.f32 %v382_v30, %v373_v15  ;;  %v390_v25 = vmul.f32 %v382_v30, %v374_v16 }
  0xb2   : > { %v404_v40 = vpop.permute.xlu1 %403  ;;  %v402_v41 = vpop.permute.xlu0 %401  ;;  %vm1583_vm13 = vcmp.eq.s32.totalorder %v516_v11, 1 }
  0xb3   : > { %v407_v35 = vsel %vm405_vm1, %v400_v13, %v404_v40  ;;  %v409_v26 = vsel %vm405_vm1, %v404_v40, %v400_v13  ;;  %v406_v42 = vsel %vm405_vm1, %v398_v14, %v402_v41  ;;  %v408_v43 = vsel %vm405_vm1, %v402_v41, %v398_v14 }
  0xb4   : > { %v426_v30 = vmul.f32 %v417_v54, %v409_v26  ;;  %v427_v44 = vmul.f32 %v421_v3, %v407_v35  ;;  %v444_v45 = vsel %vm1514_vm3, %v409_v26, -3.4028235e+38  ;;  %v445_v46 = vsel %vm1522_vm6, %v407_v35, -3.4028235e+38 }
  0xb5   : > { %v448_v47 = vmax.f32 %v371_v22, %v444_v45  ;;  %v449_v48 = vmax.f32 %v372_v28, %v445_v46  ;;  %v424_v49 = vmul.f32 %v417_v54, %v408_v43  ;;  %v425_v50 = vmul.f32 %v421_v3, %v406_v42 }
  0xb6   : > { %v430_v52 = vadd.f32 %v426_v30, %v349_v60  ;;  %v431_v53 = vadd.f32 %v427_v44, %v350_v61  ;;  %v452_v55 = vmax.f32 %v426_v30, 0.0  ;;  %v453_v56 = vmax.f32 %v427_v44, 0.0  ;;  %v541_v57 = vpop.permute.xlu1 %540  ;;  %v1552_v58 = vpop.permute.xlu0 %535 }
  0xb7   : > { %v428_v59 = vadd.f32 %v424_v49, %v347_v0  ;;  %v429_v62 = vadd.f32 %v425_v50, %v348_v1  ;;  %v442_v63 = vsel %vm1514_vm3, %v408_v43, -3.4028235e+38  ;;  %v443_v9 = vsel %vm1522_vm6, %v406_v42, -3.4028235e+38 }
  0xb8   : > { %v468_v10 = vmul.f32 %v1472_v34, %v452_v55  ;;  %v469_v54 = vmul.f32 %v1472_v34, %v453_v56  ;;  %v446_v3 = vmax.f32 %v369_v36, %v442_v63  ;;  %v447_v60 = vmax.f32 %v370_v39, %v443_v9 }
  0xb9   : > { %v450_v0 = vmax.f32 %v424_v49, 0.0  ;;  %v451_v1 = vmax.f32 %v425_v50, 0.0  ;;  %v498_v22 = vrot.slane %v1180_v21, %v1470_v33  ;;  %v565_v39 = vsel %vm564_vm10, 1, %v1255_v2 }
  0xba   : > { %v472_v12 = vadd.f32 %v468_v10, %v391_v19  ;;  %v473_v13 = vadd.f32 %v469_v54, %v392_v20  ;;  %v477_v14 = vpop.permute.xlu1 %476  ;;  %v475_v34 = vpop.permute.xlu0 %474  ;;  %v1181_v21 = vsel %vm564_vm10, 1.0, %v1264_v38  ;;  %vm306_vm6 = vcmp.ge.f32.partialorder %v1443_v23, -1.0  ;;  %vm705_vm10 = vmand %vm1564_vm4, %vm1498_vm0 }
  0xbb   : > { %v466_v15 = vmul.f32 %v1458_v29, %v450_v0  ;;  %v467_v16 = vmul.f32 %v1458_v29, %v451_v1  ;;  %vm700_vm4 = vcmp.lt.s32.totalorder %v1479_v37, 127 }
  0xbd   : > { %v470_v18 = vadd.f32 %v466_v15, %v389_v24  ;;  %v471_v19 = vadd.f32 %v467_v16, %v390_v25  ;;  %v1599_v24 = vsel %vm628_vm14, 1, %v1255_v2  ;;  %v593_v15 = vrot.slane %v565_v39, %v1470_v33 }
  0xbe   : > { %v481_v29 = vpop.permute.xlu1 %480  ;;  %v479_v36 = vpop.permute.xlu0 %478 }
  0xbf   : > { %v484_v25 = vsel %vm482_vm11, %v477_v14, %v481_v29  ;;  %v486_v40 = vsel %vm482_vm11, %v481_v29, %v477_v14  ;;  %v483_v41 = vsel %vm482_vm11, %v475_v34, %v479_v36  ;;  %v485_v35 = vsel %vm482_vm11, %v479_v36, %v475_v34  ;;  %vm1709_vm11 = vmand %vm306_vm6, %vm307_vm7 }
  0xc0   : > { %v503_v26 = vmul.f32 %v494_v17, %v486_v40  ;;  %v504_v42 = vmul.f32 %v498_v22, %v484_v25  ;;  %v521_v43 = vsel %vm1579_vm12, %v486_v40, -3.4028235e+38  ;;  %v522_v30 = vsel %vm1583_vm13, %v484_v25, -3.4028235e+38 }
  0xc1   : > { %v525_v44 = vmax.f32 %v448_v47, %v521_v43  ;;  %v526_v45 = vmax.f32 %v449_v48, %v522_v30  ;;  %v501_v46 = vmul.f32 %v494_v17, %v485_v35  ;;  %v502_v49 = vmul.f32 %v498_v22, %v483_v41 }
  0xc2   : > { %v507_v50 = vadd.f32 %v503_v26, %v430_v52  ;;  %v508_v55 = vadd.f32 %v504_v42, %v431_v53  ;;  %v529_v56 = vmax.f32 %v503_v26, 0.0  ;;  %v530_v63 = vmax.f32 %v504_v42, 0.0  ;;  %v1613_v9 = vpop.permute.xlu1 %617  ;;  %v1615_v10 = vpop.permute.xlu0 %612 }
  0xc3   : > { %v505_v54 = vadd.f32 %v501_v46, %v428_v59  ;;  %v506_v0 = vadd.f32 %v502_v49, %v429_v62  ;;  %v519_v1 = vsel %vm1579_vm12, %v485_v35, -3.4028235e+38  ;;  %v520_v4 = vsel %vm1583_vm13, %v483_v41, -3.4028235e+38  ;;  %vm782_vm12 = vmand %vm1709_vm11, %vm1454_vm5 }
  0xc4   : > { %v545_v47 = vmul.f32 %v541_v57, %v529_v56  ;;  %v546_v48 = vmul.f32 %v541_v57, %v530_v63  ;;  %v523_v11 = vmax.f32 %v446_v3, %v519_v1  ;;  %v524_v14 = vmax.f32 %v447_v60, %v520_v4 }
  0xc5   : > { %v527_v52 = vmax.f32 %v501_v46, 0.0  ;;  %v528_v53 = vmax.f32 %v502_v49, 0.0  ;;  %v589_v34 = vrot.slane %v565_v39, %v1468_v32  ;;  %v657_v22 = vrot.slane %v1599_v24, %v1470_v33 }
  0xc6   : > { %v554_v16 = vpop.permute.xlu1 %553  ;;  %v552_v17 = vpop.permute.xlu0 %551  ;;  %v1623_v59 = vadd.f32 %v545_v47, %v472_v12  ;;  %v1625_v62 = vadd.f32 %v546_v48, %v473_v13  ;;  %v571_v3 = vrot.slane %v1181_v21, %v1468_v32  ;;  %v575_v60 = vrot.slane %v1181_v21, %v1470_v33 }
  0xc7   : > { %v543_v20 = vmul.f32 %v1552_v58, %v527_v52  ;;  %v544_v57 = vmul.f32 %v1552_v58, %v528_v53  ;;  %v1182_v12 = vsel %vm628_vm14, 1.0, %v1264_v38  ;;  %vm1640_vm1 = vcmp.eq.s32.totalorder %v589_v34, 1 }
  0xc8   : > { %vm1644_vm2 = vcmp.eq.s32.totalorder %v593_v15, 1  ;;  %v653_v21 = vrot.slane %v1599_v24, %v1468_v32  ;;  %vm1654_vm3 = vcmp.eq.s32.totalorder %v657_v22, 1  ;;  %v639_v1 = vrot.slane %v1182_v12, %v1470_v33 }
  0xc9   : > { %v1648_v58 = vadd.f32 %v543_v20, %v470_v18  ;;  %v1650_v29 = vadd.f32 %v544_v57, %v471_v19  ;;  %v635_v34 = vrot.slane %v1182_v12, %v1468_v32  ;;  %v661_v23 = vsel %vm1654_vm3, %v1366_v8, -3.4028235e+38 }
  0xca   : > { %v558_v36 = vpop.permute.xlu1 %557  ;;  %v556_v39 = vpop.permute.xlu0 %555  ;;  %vm1687_vm8 = vcmp.eq.s32.totalorder %v653_v21, 1  ;;  %v1183_v12 = vsel %vm705_vm10, 1.0, %v1264_v38  ;;  %vm931_vm7 = vcmp.lt.s32.totalorder %v1479_v37, 111 }
  0xcb   : > { %v561_v40 = vsel %vm559_vm15, %v554_v16, %v558_v36  ;;  %v563_v18 = vsel %vm559_vm15, %v558_v36, %v554_v16  ;;  %v560_v19 = vsel %vm559_vm15, %v552_v17, %v556_v39  ;;  %v562_v24 = vsel %vm559_vm15, %v556_v39, %v552_v17  ;;  %vm859_vm15 = vmand %vm1709_vm11, %vm1464_vm9 }
  0xcc   : > { %v1668_v41 = vmul.f32 %v571_v3, %v563_v18  ;;  %v1670_v35 = vmul.f32 %v575_v60, %v561_v40  ;;  %v598_v26 = vsel %vm1640_vm1, %v563_v18, -3.4028235e+38  ;;  %v599_v42 = vsel %vm1644_vm2, %v561_v40, -3.4028235e+38 }
  0xcd   : > { %v602_v43 = vmax.f32 %v525_v44, %v598_v26  ;;  %v603_v30 = vmax.f32 %v526_v45, %v599_v42  ;;  %v1676_v46 = vmul.f32 %v571_v3, %v562_v24  ;;  %v1678_v49 = vmul.f32 %v575_v60, %v560_v19 }
  0xce   : > { %v584_v56 = vadd.f32 %v1668_v41, %v507_v50  ;;  %v585_v63 = vadd.f32 %v1670_v35, %v508_v55  ;;  %v1683_v4 = vpop.permute.xlu1 %681  ;;  %v1685_v47 = vpop.permute.xlu0 %676  ;;  %v596_v52 = vsel %vm1640_vm1, %v562_v24, -3.4028235e+38  ;;  %v597_v50 = vsel %vm1644_vm2, %v560_v19, -3.4028235e+38  ;;  %vm936_vm1 = vmand %vm1709_vm11, %vm1498_vm0 }
  0xcf   : > { %v582_v44 = vadd.f32 %v1676_v46, %v505_v54  ;;  %v583_v45 = vadd.f32 %v1678_v49, %v506_v0  ;;  %v600_v55 = vmax.f32 %v523_v11, %v596_v52  ;;  %v601_v53 = vmax.f32 %v524_v14, %v597_v50 }
  0xd0   : > { %v663_v54 = vsel %vm1654_vm3, %v1364_v7, -3.4028235e+38  ;;  %v662_v15 = vsel %vm1687_vm8, %v1358_v5, -3.4028235e+38  ;;  %v706_v16 = vsel %vm705_vm10, 1, %v1255_v2  ;;  %v1730_v17 = vmul.f32 %v639_v1, %v1364_v7 }
  0xd1   : > { %v667_v22 = vmax.f32 %v603_v30, %v663_v54  ;;  %v660_v20 = vsel %vm1687_vm8, %v1360_v6, -3.4028235e+38  ;;  %v1740_v57 = vmul.f32 %v635_v34, %v1358_v5  ;;  %v1743_v3 = vmul.f32 %v639_v1, %v1366_v8 }
  0xd2   : > { %v1716_v11 = vpop.permute.xlu1 %758  ;;  %v1718_v14 = vpop.permute.xlu0 %753  ;;  %v666_v60 = vmax.f32 %v602_v43, %v662_v15  ;;  %v730_v13 = vrot.slane %v706_v16, %v1468_v32  ;;  %v734_v28 = vrot.slane %v706_v16, %v1470_v33  ;;  %v665_v36 = vmax.f32 %v601_v53, %v661_v23 }
  0xd3   : > { %v664_v25 = vmax.f32 %v600_v55, %v660_v20  ;;  %v783_v40 = vsel %vm782_vm12, 1, %v1255_v2  ;;  %v671_v61 = vmax.f32 %v1730_v17, 0.0  ;;  %v1761_v18 = vmul.f32 %v635_v34, %v1360_v6 }
  0xd4   : > { %v670_v19 = vmax.f32 %v1740_v57, 0.0  ;;  %v712_v24 = vrot.slane %v1183_v12, %v1468_v32  ;;  %v716_v26 = vrot.slane %v1183_v12, %v1470_v33  ;;  %v669_v42 = vmax.f32 %v1743_v3, 0.0 }
  0xd5   : > { %vm1768_vm13 = vcmp.eq.s32.totalorder %v730_v13, 1  ;;  %vm1772_vm14 = vcmp.eq.s32.totalorder %v734_v28, 1  ;;  %v807_v1 = vrot.slane %v783_v40, %v1468_v32  ;;  %v649_v48 = vadd.f32 %v1730_v17, %v585_v63 }
  0xd6   : > { %v695_v39 = vpop.permute.xlu1 %694  ;;  %v693_v21 = vpop.permute.xlu0 %692  ;;  %v648_v50 = vadd.f32 %v1740_v57, %v584_v56  ;;  %v647_v55 = vadd.f32 %v1743_v3, %v583_v45  ;;  %v646_v34 = vadd.f32 %v1761_v18, %v582_v44  ;;  %v606_v28 = vmax.f32 %v1668_v41, 0.0 }
  0xd7   : > { %v668_v31 = vmax.f32 %v1761_v18, 0.0  ;;  %v1184_v43 = vsel %vm782_vm12, 1.0, %v1264_v38  ;;  %vm777_vm9 = vcmp.lt.s32.totalorder %v1479_v37, 113  ;;  %v860_v30 = vsel %vm859_vm15, 1, %v1255_v2 }
  0xd8   : > { %v1186_v27 = vsel %vm936_vm1, 1.0, %v1264_v38  ;;  %vm1845_vm5 = vcmp.eq.s32.totalorder %v807_v1, 1  ;;  %v686_v1 = vmul.f32 %v1683_v4, %v670_v19  ;;  %vm854_vm0 = vcmp.lt.s32.totalorder %v1479_v37, 112 }
  0xd9   : > { %vm1009_vm11 = vcmask 130048  }
  0xda   : > { %v699_v52 = vpop.permute.xlu1 %698  ;;  %v697_v53 = vpop.permute.xlu0 %696 }
  0xdb   : > { %v702_v54 = vsel %vm700_vm4, %v695_v39, %v699_v52  ;;  %v704_v15 = vsel %vm700_vm4, %v699_v52, %v695_v39  ;;  %v701_v16 = vsel %vm700_vm4, %v693_v21, %v697_v53  ;;  %v703_v63 = vsel %vm700_vm4, %v697_v53, %v693_v21 }
  0xdc   : > { %v1789_v23 = vmul.f32 %v712_v24, %v702_v54  ;;  %v1791_v56 = vmul.f32 %v716_v26, %v704_v15  ;;  %v739_v45 = vsel %vm1768_vm13, %v702_v54, -3.4028235e+38  ;;  %v740_v44 = vsel %vm1772_vm14, %v704_v15, -3.4028235e+38 }
  0xdd   : > { %v743_v20 = vmax.f32 %v666_v60, %v739_v45  ;;  %v744_v57 = vmax.f32 %v667_v22, %v740_v44  ;;  %v1797_v12 = vmul.f32 %v712_v24, %v701_v16  ;;  %v1799_v13 = vmul.f32 %v716_v26, %v703_v63 }
  0xde   : > { %v725_v39 = vadd.f32 %v1789_v23, %v648_v50  ;;  %v726_v21 = vadd.f32 %v1791_v56, %v649_v48  ;;  %v1804_v52 = vpop.permute.xlu1 %835  ;;  %v1806_v53 = vpop.permute.xlu0 %830  ;;  %v811_v54 = vrot.slane %v783_v40, %v1470_v33  ;;  %v737_v41 = vsel %vm1768_vm13, %v701_v16, -3.4028235e+38 }
  0xdf   : > { %v723_v22 = vadd.f32 %v1797_v12, %v646_v34  ;;  %v724_v60 = vadd.f32 %v1799_v13, %v647_v55  ;;  %v738_v24 = vsel %vm1772_vm14, %v703_v63, -3.4028235e+38  ;;  %v741_v40 = vmax.f32 %v664_v25, %v737_v41 }
  0xe0   : > { %v742_v26 = vmax.f32 %v665_v36, %v738_v24  ;;  %v607_v48 = vmax.f32 %v1670_v35, 0.0  ;;  %v1185_v50 = vsel %vm859_vm15, 1.0, %v1264_v38  ;;  %v622_v55 = vmul.f32 %v1613_v9, %v606_v28 }
  0xe1   : > { %v604_v25 = vmax.f32 %v1676_v46, 0.0  ;;  %v605_v36 = vmax.f32 %v1678_v49, 0.0  ;;  %v789_v35 = vrot.slane %v1184_v43, %v1468_v32  ;;  %v793_v15 = vrot.slane %v1184_v43, %v1470_v33 }
  0xe2   : > { %v772_v18 = vpop.permute.xlu1 %771  ;;  %v770_v34 = vpop.permute.xlu0 %769  ;;  %vm1849_vm2 = vcmp.eq.s32.totalorder %v811_v54, 1  ;;  %v1854_v49 = vrot.slane %v1185_v50, %v1468_v32  ;;  %v1857_v63 = vrot.slane %v1185_v50, %v1470_v33  ;;  %v884_v38 = vrot.slane %v860_v30, %v1468_v32 }
  0xe3   : > { %v888_v45 = vrot.slane %v860_v30, %v1470_v33  ;;  %v623_v44 = vmul.f32 %v1613_v9, %v607_v48  ;;  %v1869_v28 = vsel %vm936_vm1, 1, %v1255_v2  ;;  %v1872_v54 = vrot.slane %v1186_v27, %v1468_v32 }
  0xe4   : > { %v620_v41 = vmul.f32 %v1615_v10, %v604_v25  ;;  %v621_v24 = vmul.f32 %v1615_v10, %v605_v36  ;;  %v626_v43 = vadd.f32 %v622_v55, %v1623_v59  ;;  %v687_v9 = vmul.f32 %v1683_v4, %v671_v61 }
  0xe5   : > { %vm1897_vm3 = vcmp.eq.s32.totalorder %v884_v38, 1  ;;  %vm1901_vm6 = vcmp.eq.s32.totalorder %v888_v45, 1  ;;  %v685_v16 = vmul.f32 %v1685_v47, %v669_v42 }
  0xe6   : > { %v776_v19 = vpop.permute.xlu1 %775  ;;  %v774_v0 = vpop.permute.xlu0 %773  ;;  %v624_v45 = vadd.f32 %v620_v41, %v1648_v58 }
  0xe7   : > { %v779_v51 = vsel %vm777_vm9, %v772_v18, %v776_v19  ;;  %v781_v2 = vsel %vm777_vm9, %v776_v19, %v772_v18  ;;  %v778_v48 = vsel %vm777_vm9, %v770_v34, %v774_v0  ;;  %v780_v10 = vsel %vm777_vm9, %v774_v0, %v770_v34 }
  0xe8   : > { %v798_v59 = vmul.f32 %v789_v35, %v779_v51  ;;  %v799_v17 = vmul.f32 %v793_v15, %v781_v2  ;;  %v816_v4 = vsel %vm1845_vm5, %v779_v51, -3.4028235e+38  ;;  %v817_v61 = vsel %vm1849_vm2, %v781_v2, -3.4028235e+38 }
  0xe9   : > { %v820_v30 = vmax.f32 %v743_v20, %v816_v4  ;;  %v821_v50 = vmax.f32 %v744_v57, %v817_v61  ;;  %v796_v55 = vmul.f32 %v789_v35, %v778_v48  ;;  %v1895_v25 = vmul.f32 %v793_v15, %v780_v10 }
  0xea   : > { %v627_v34 = vadd.f32 %v623_v44, %v1625_v62  ;;  %v684_v19 = vmul.f32 %v1685_v47, %v668_v31  ;;  %v802_v0 = vadd.f32 %v798_v59, %v725_v39  ;;  %v803_v51 = vadd.f32 %v799_v17, %v726_v21  ;;  %v1907_v2 = vpop.permute.xlu1 %912  ;;  %v1909_v20 = vpop.permute.xlu0 %907 }
  0xeb   : > { %v800_v57 = vadd.f32 %v796_v55, %v723_v22  ;;  %v801_v35 = vadd.f32 %v1895_v25, %v724_v60  ;;  %v814_v15 = vsel %vm1845_vm5, %v778_v48, -3.4028235e+38  ;;  %v815_v38 = vsel %vm1849_vm2, %v780_v10, -3.4028235e+38 }
  0xec   : > { %v625_v62 = vadd.f32 %v621_v24, %v1650_v29  ;;  %v818_v39 = vmax.f32 %v741_v40, %v814_v15  ;;  %v819_v21 = vmax.f32 %v742_v26, %v815_v38  ;;  %v747_v31 = vmax.f32 %v1789_v23, 0.0 }
  0xed   : > { %v748_v44 = vmax.f32 %v1791_v56, 0.0  ;;  %v745_v22 = vmax.f32 %v1797_v12, 0.0  ;;  %v746_v60 = vmax.f32 %v1799_v13, 0.0  ;;  %v824_v46 = vmax.f32 %v798_v59, 0.0 }
  0xee   : > { %v825_v48 = vmax.f32 %v799_v17, 0.0  ;;  %v822_v58 = vmax.f32 %v796_v55, 0.0  ;;  %v849_v41 = vpop.permute.xlu1 %848  ;;  %v847_v29 = vpop.permute.xlu0 %846  ;;  %v1926_v40 = vrot.slane %v1186_v27, %v1470_v33  ;;  %v961_v23 = vrot.slane %v1869_v28, %v1468_v32 }
  0xef   : > { %v965_v56 = vrot.slane %v1869_v28, %v1470_v33  ;;  %v1933_v12 = vstv %s1888_s21  ;;  %v690_v13 = vadd.f32 %v686_v1, %v626_v43  ;;  %v691_v3 = vadd.f32 %v687_v9, %v627_v34 }
  0xf0   : > { %v688_v26 = vadd.f32 %v684_v19, %v624_v45  ;;  %v689_v47 = vadd.f32 %v685_v16, %v625_v62  ;;  %v763_v42 = vmul.f32 %v1716_v11, %v747_v31  ;;  %v764_v24 = vmul.f32 %v1716_v11, %v748_v44 }
  0xf1   : > { %v761_v10 = vmul.f32 %v1718_v14, %v745_v22  ;;  %v762_v27 = vmul.f32 %v1718_v14, %v746_v60  ;;  %v840_v59 = vmul.f32 %v1804_v52, %v824_v46  ;;  %v841_v17 = vmul.f32 %v1804_v52, %v825_v48 }
  0xf2   : > { %v823_v28 = vmax.f32 %v1895_v25, 0.0  ;;  %v838_v4 = vmul.f32 %v1806_v53, %v822_v58  ;;  %v853_v1 = vpop.permute.xlu1 %852  ;;  %v851_v43 = vpop.permute.xlu0 %850  ;;  %vm1962_vm8 = vcmp.eq.s32.totalorder %v961_v23, 1  ;;  %vm1966_vm10 = vcmp.eq.s32.totalorder %v965_v56, 1 }
  0xf3   : > { %v856_v9 = vsel %vm854_vm0, %v849_v41, %v853_v1  ;;  %v858_v11 = vsel %vm854_vm0, %v853_v1, %v849_v41  ;;  %v855_v61 = vsel %vm854_vm0, %v847_v29, %v851_v43  ;;  %v857_v14 = vsel %vm854_vm0, %v851_v43, %v847_v29  ;;  %v1062_v29 = vld [vmem:[%s2042_s4] sm:$0x3] }
  0xf4   : > { %v875_v52 = vmul.f32 %v1854_v49, %v856_v9  ;;  %v876_v55 = vmul.f32 %v1857_v63, %v858_v11  ;;  %v893_v25 = vsel %vm1897_vm3, %v856_v9, -3.4028235e+38  ;;  %v894_v34 = vsel %vm1901_vm6, %v858_v11, -3.4028235e+38 }
  0xf5   : > { %v897_v19 = vmax.f32 %v820_v30, %v893_v25  ;;  %v898_v15 = vmax.f32 %v821_v50, %v894_v34  ;;  %v873_v38 = vmul.f32 %v1854_v49, %v855_v61  ;;  %v874_v45 = vmul.f32 %v1857_v63, %v857_v14 }
  0xf6   : > { %v879_v44 = vadd.f32 %v875_v52, %v802_v0  ;;  %v880_v22 = vadd.f32 %v876_v55, %v803_v51  ;;  %v901_v60 = vmax.f32 %v875_v52, 0.0  ;;  %v902_v16 = vmax.f32 %v876_v55, 0.0  ;;  %v1970_v46 = vpop.permute.xlu1 %989  ;;  %v1972_v30 = vpop.permute.xlu0 %984 }
  0xf7   : > { %v877_v50 = vadd.f32 %v873_v38, %v800_v57  ;;  %v878_v49 = vadd.f32 %v874_v45, %v801_v35  ;;  %v891_v63 = vsel %vm1897_vm3, %v855_v61, -3.4028235e+38  ;;  %v892_v48 = vsel %vm1901_vm6, %v857_v14, -3.4028235e+38 }
  0xf8   : > { %v839_v58 = vmul.f32 %v1806_v53, %v823_v28  ;;  %v895_v41 = vmax.f32 %v818_v39, %v891_v63  ;;  %v896_v0 = vmax.f32 %v819_v21, %v892_v48  ;;  %v899_v51 = vmax.f32 %v873_v38, 0.0 }
  0xf9   : > { %v767_v23 = vadd.f32 %v763_v42, %v690_v13  ;;  %v765_v56 = vadd.f32 %v761_v10, %v688_v26  ;;  %v900_v57 = vmax.f32 %v874_v45, 0.0  ;;  %v768_v35 = vadd.f32 %v764_v24, %v691_v3 }
  0xfa   : > { %v917_v36 = vmul.f32 %v1907_v2, %v901_v60  ;;  %v915_v1 = vmul.f32 %v1909_v20, %v899_v51  ;;  %v926_v18 = vpop.permute.xlu1 %925  ;;  %v924_v43 = vpop.permute.xlu0 %923  ;;  %v766_v9 = vadd.f32 %v762_v27, %v689_v47  ;;  %v918_v53 = vmul.f32 %v1907_v2, %v902_v16 }
  0xfb   : > { %v916_v39 = vmul.f32 %v1909_v20, %v900_v57  ;;  %v1067_v21 = vrot.slane %v1062_v29, %v1468_v32  ;;  %v1988_v28 = vstv %s1951_s22  ;;  %v1071_v13 = vrot.slane %v1062_v29, %v1470_v33 }
  0xfc   : > { %v843_v26 = vadd.f32 %v839_v58, %v766_v9  ;;  %v845_v42 = vadd.f32 %v841_v17, %v768_v35  ;;  %v842_v3 = vadd.f32 %v838_v4, %v765_v56  ;;  %v844_v24 = vadd.f32 %v840_v59, %v767_v23 }
  0xfd   : > { %v1058_v10 = vmul.f32 %v1933_v12, %v1360_v6  ;;  %v1059_v47 = vmul.f32 %v1933_v12, %v1366_v8  ;;  %v1060_v2 = vmul.f32 %v1933_v12, %v1358_v5  ;;  %v1061_v32 = vmul.f32 %v1933_v12, %v1364_v7 }
  0xfe   : > { %v930_v20 = vpop.permute.xlu1 %929  ;;  %v928_v27 = vpop.permute.xlu0 %927  ;;  %v920_v11 = vadd.f32 %v916_v39, %v843_v26  ;;  %v922_v33 = vadd.f32 %v918_v53, %v845_v42  ;;  %v919_v61 = vadd.f32 %v915_v1, %v842_v3  ;;  %v921_v17 = vadd.f32 %v917_v36, %v844_v24  ;;  %v1226_v42 = vld [vmem:[%s2044_s6] sm:$0xff]  }
  0xff   : > { %v933_v59 = vsel %vm931_vm7, %v926_v18, %v930_v20  ;;  %v935_v6 = vsel %vm931_vm7, %v930_v20, %v926_v18  ;;  %v932_v8 = vsel %vm931_vm7, %v924_v43, %v928_v27  ;;  %v934_v5 = vsel %vm931_vm7, %v928_v27, %v924_v43 }
 0x100   : > { %v952_v7 = vmul.f32 %v1872_v54, %v933_v59  ;;  %v953_v12 = vmul.f32 %v1926_v40, %v935_v6  ;;  %v970_v4 = vsel %vm1962_vm8, %v933_v59, -3.4028235e+38  ;;  %v971_v14 = vsel %vm1966_vm10, %v935_v6, -3.4028235e+38 }
 0x101   : > { %v974_v52 = vmax.f32 %v897_v19, %v970_v4  ;;  %v975_v55 = vmax.f32 %v898_v15, %v971_v14  ;;  %v950_v25 = vmul.f32 %v1872_v54, %v932_v8  ;;  %v951_v34 = vmul.f32 %v1926_v40, %v934_v5 }
 0x102   : > { %v956_v38 = vadd.f32 %v952_v7, %v879_v44  ;;  %v957_v45 = vadd.f32 %v953_v12, %v880_v22  ;;  %v978_v37 = vmax.f32 %v952_v7, 0.0  ;;  %v979_v60 = vmax.f32 %v953_v12, 0.0 }
 0x103   : > { %v954_v16 = vadd.f32 %v950_v25, %v877_v50  ;;  %v955_v63 = vadd.f32 %v951_v34, %v878_v49  ;;  %v968_v48 = vsel %vm1962_vm8, %v932_v8, -3.4028235e+38  ;;  %v969_v58 = vsel %vm1966_vm10, %v934_v5, -3.4028235e+38 }
 0x104   : > { %v972_v51 = vmax.f32 %v895_v41, %v968_v48  ;;  %v973_v29 = vmax.f32 %v896_v0, %v969_v58  ;;  %v976_v19 = vmax.f32 %v950_v25, 0.0  ;;  %v977_v15 = vmax.f32 %v951_v34, 0.0 }
 0x105   : > { %v995_v54 = vmul.f32 %v1970_v46, %v979_v60  ;;  %v994_v40 = vmul.f32 %v1970_v46, %v978_v37  ;;  %v1074_v44 = vmul.f32 %v1067_v21, %v954_v16  ;;  %v1075_v22 = vmul.f32 %v1071_v13, %v955_v63 }
 0x106   : > { %v993_v23 = vmul.f32 %v1972_v30, %v977_v15  ;;  %v992_v50 = vmul.f32 %v1972_v30, %v976_v19  ;;  %v1084_v62 = vmul.f32 %v1988_v28, %v972_v51  ;;  %v1085_v49 = vmul.f32 %v1988_v28, %v973_v29 }
 0x107   : > { %v999_v31 = vadd.f32 %v995_v54, %v922_v33  ;;  %v998_v56 = vadd.f32 %v994_v40, %v921_v17  ;;  %v1078_v41 = vadd.f32 %v1074_v44, %v1058_v10  ;;  %v1079_v0 = vadd.f32 %v1075_v22, %v1059_v47 }
 0x108   : > { %v997_v57 = vadd.f32 %v993_v23, %v920_v11  ;;  %v996_v35 = vadd.f32 %v992_v50, %v919_v61  ;;  %v1076_v36 = vmul.f32 %v1067_v21, %v956_v38  ;;  %v1077_v18 = vmul.f32 %v1071_v13, %v957_v45 }
 0x109   : > { %v1088_v1 = vadd.f32 %v1084_v62, %v1078_v41  ;;  %v1089_v46 = vadd.f32 %v1085_v49, %v1079_v0  ;;  %v1086_v30 = vmul.f32 %v1988_v28, %v974_v52  ;;  %v1087_v26 = vmul.f32 %v1988_v28, %v975_v55 }
 0x10a   : > { %v1003_v43 = vpack.c.bf16 %v999_v31, %v997_v57  ;;  %v1002_v9 = vpack.c.bf16 %v998_v56, %v996_v35  ;;  %v1080_v53 = vadd.f32 %v1076_v36, %v1060_v2  ;;  %v1081_v39 = vadd.f32 %v1077_v18, %v1061_v32 }
 0x10c   : > { %1013 = vmatprep.subr.bf16.mxu0 %v1003_v43  ;;  %v1090_v3 = vadd.f32 %v1086_v30, %v1080_v53  ;;  %v1091_v21 = vadd.f32 %v1087_v26, %v1081_v39 }
 0x10d   : > { %1014 = vmatpush1.bf16.msra.mxu0 %v1002_v9 }
 0x110   : > { %1188 = vmatmul.mubr.msk.bf16.vlgmr.msra.gmra.mrb[0].mxu0 %vm1009_vm11, %v1226_v42 }
 0x1e3   : > { %v1047_v13 = vpop.f32.mrb[0].mxu0 }
 0x1e4   : > { %v1092_v24 = vadd.f32 %v1088_v1, %v1047_v13  ;;  %v1049_v10 = vpop.f32.mrb[1].mxu0 }
 0x1e5   : > { %v1093_v47 = vadd.f32 %v1089_v46, %v1049_v10  ;;  %v1051_v28 = vpop.f32.mrb[2].mxu0 }
 0x1e6   : > { %1096 = vst [vmem:[%s292_s8] sm:$0xff] %v1092_v24  ;;  %v1094_v2 = vadd.f32 %v1090_v3, %v1051_v28  ;;  %v1053_v32 = vpop.f32.mrb[3].mxu0 }
 0x1e7   : > { %1097 = vst [vmem:[%s292_s8 + $0x8] sm:$0xff] %v1093_v47  ;;  %v1095_v20 = vadd.f32 %v1091_v21, %v1053_v32 }
 0x1e8   : > { %1098 = vst [vmem:[%s292_s8 + $0x10] sm:$0xff] %v1094_v2 }
 0x1e9   : > { %1099 = vst [vmem:[%s292_s8 + $0x18] sm:$0xff] %v1095_v20 }
 0x1ea PF: > { %s18_s24 = sadd.s32 1, %s1252_s24  }
 0x1eb   : > { %p15_p1 = scmp.ge.s32.totalorder %s18_s24, 4  }
 0x1ed   :  { %17 = sbr.rel (!%p15_p1) target bundleno = 1 (0x1), region = 83 }
 0x1f4   :  { %1121 = vsyncpa [#allocation3], 1 }
 0x1f5   :  { %1123 = vsyncpa [#allocation3 + $0x1], 1 }

</bundles_post_ra>
